<compile_context>
chip_gen: v7x
topology: tpu7x:2x2x1
jax: 0.10.0
libtpu: 0.0.40
codegen_flags: <defaults>
</compile_context>

<pallas_src>
import math

import jax
import jax.numpy as jnp
from jax.experimental import pallas as pl
from jax.experimental.pallas import tpu as pltpu


def _identity_copy_kernel(x_ref, o_ref):
    # Dropout(p=0.0): keep everything, scale by 1/(1-0.0) == 1.0 -> identity.
    o_ref[...] = x_ref[...]


# Rows per tile when the flattened activation is large. 1024 rows x C keeps
# the double-buffered footprint to a few MiB even for wide channel counts,
# which fits comfortably under the 32 MiB scoped VMEM default on all of
# v5e / v6e / v7x while still reaching ~85%+ of HBM roofline for a copy.
_TILE_ROWS = 1024


def dropout_p0(x: jax.Array, p: float = 0.0, *, use_kernel: bool = True) -> jax.Array:
    """Dropout(p=0.0) forward (identity), optionally via a Pallas TPU kernel.

    `use_kernel=False` is the recommended production fast path (zero cost);
    `use_kernel=True` runs the Pallas identity-copy kernel described above.
    """
    # This building block only implements the p == 0.0 (identity) case.
    # TODO(synk): p > 0 training-mode dropout would need a tiled kernel with
    # pltpu.prng_seed / pltpu.prng_random_bits per tile.
    assert p == 0.0, "dropout_p0 only supports p == 0.0"

    if not use_kernel:
        return x  # strict win: no launch overhead, no HBM round-trip.

    orig_shape = x.shape
    c = orig_shape[-1]
    rows = math.prod(orig_shape[:-1]) if len(orig_shape) > 1 else 1
    x2 = x.reshape(rows, c)

    if rows <= _TILE_ROWS:
        # Single block equal to the full array extent: the (8,128) block
        # divisibility constraint does not apply, no grid loop needed.
        block_rows = rows
        grid = (1,)
        compiler_params = None  # dimension_semantics on a 1-point grid is dead weight
    else:
        # Row-tiled grid; each tile is (TILE_ROWS, C) with C a lane-dense
        # multiple of 128 (384 here). Mark the row axis "parallel" so the two
        # TensorCores on v7x split the memory-bound copy.
        block_rows = _TILE_ROWS
        grid = (pl.cdiv(rows, _TILE_ROWS),)
        compiler_params = pltpu.CompilerParams(dimension_semantics=("parallel",))

    out2 = pl.pallas_call(
        _identity_copy_kernel,
        out_shape=jax.ShapeDtypeStruct((rows, c), x.dtype),
        grid=grid,
        in_specs=[pl.BlockSpec((block_rows, c), lambda i: (i, 0))],
        out_specs=pl.BlockSpec((block_rows, c), lambda i: (i, 0)),
        # Identity op: let the output alias the input HBM buffer instead of
        # allocating and writing a fresh array.
        input_output_aliases={0: 0},
        compiler_params=compiler_params,
    )(x2)

    return out2.reshape(orig_shape)


if __name__ == "__main__":
    key = jax.random.PRNGKey(0)
    # Shape implied by the module's forward: [1, 14, 14, 384] (NHWC).
    x407 = jax.random.normal(key, (1, 14, 14, 384), dtype=jnp.float32)

    x408 = dropout_p0(x407)  # exercises the Pallas kernel path
    jax.block_until_ready(x408)

    # Dropout(p=0.0) must be an exact identity.
    assert x408.shape == x407.shape
    assert x408.dtype == x407.dtype
    assert bool(jnp.all(x408 == x407))

    # Also sanity-check the zero-cost production fast path.
    x408_fast = dropout_p0(x407, use_kernel=False)
    assert x408_fast is x407

    print("KERNEL_OK")
</pallas_src>

<mosaic_0001>
module attributes {stable_mosaic.version = 11 : i64} {
  func.func @_identity_copy_kernel(%arg0: i32, %arg1: memref<196x384xf32, #tpu.memory_space<vmem>>, %arg2: memref<196x384xf32, #tpu.memory_space<vmem>>) attributes {dimension_semantics = [#tpu.dimension_semantics<arbitrary>], iteration_bounds = array<i64: 1>, scalar_prefetch = 0 : i64, scratch_operands = 0 : i64, tpu.core_type = #tpu.core_type<tc>, window_params = [{transform_indices = @transform_0, window_bounds = array<i64: 196, 384>}, {transform_indices = @transform_1, window_bounds = array<i64: 196, 384>}]} {
    %c0 = arith.constant 0 : index
    %c0_0 = arith.constant 0 : index
    %0 = vector.load %arg1[%c0, %c0_0] : memref<196x384xf32, #tpu.memory_space<vmem>>, vector<196x384xf32>
    %c0_1 = arith.constant 0 : index
    %c0_2 = arith.constant 0 : index
    %1 = vector.load %arg2[%c0_1, %c0_2] : memref<196x384xf32, #tpu.memory_space<vmem>>, vector<196x384xf32>
    tpu.vector_store %arg2[%c0_1, %c0_2], %0 {strides = array<i32>} : memref<196x384xf32, #tpu.memory_space<vmem>>, vector<196x384xf32>,
    return
  }
  func.func @transform_0(%arg0: i32) -> (i32, i32) {
    %c0_i32 = arith.constant 0 : i32
    %c0_i32_0 = arith.constant 0 : i32
    return %arg0, %c0_i32 : i32, i32
  }
  func.func @transform_1(%arg0: i32) -> (i32, i32) {
    %c0_i32 = arith.constant 0 : i32
    %c0_i32_0 = arith.constant 0 : i32
    return %arg0, %c0_i32 : i32, i32
  }
}

</mosaic_0001>

<bundles_post_ra>
// kernel: tpu_custom_call.1
= control target key start
LH: loop header
LB: loop body
LE: loop exit
PB: predicated region body
PF: predicated region fallthrough
CT: control target
= control target key end

     0   :  { %6 = vsyncpa [#allocation3], 0  ;;  %s286_s0 = inlined_call_operand.hbm [shape: f32[196,384], index: 0, kind: input, shape index: {}, may-alias: {0,1}]   ;;  %s287_s1 = inlined_call_operand.hbm [shape: f32[196,384], index: 1, kind: output, shape index: {}, may-alias: {0,1}]  }
   0x1   :  { %7 = vsyncpa [#allocation4], 0  ;;  %s242_s6 = smov [#allocation2]   ;;  %s194_s10 = scalar_lea.hbm %s286_s0, 9600 }
   0x2   :  { %s13_s7 = sshll.u32 %s242_s6, 4  ;;  %p195_p0 = scmp.ne.s32.totalorder %s286_s0, %s194_s10  ;;  %s14_s7 = int_to_ptr.vmem [resolvable:$true] %s13_s7 }
   0x3   :  { %p198_p1 = scmp.lt.u32.totalorder %s194_s10, %s286_s0 }
   0x5   :  { %p200_p2 = pnand %p198_p1, %p195_p0 }
   0x7   :  { %203 = shalt.err (!%p200_p2)
}
   0x8   :  { %s204_s15 = scalar_lea.vmem %s14_s7, 9600  ;;  %p209_p4 = scmp.lt.s32.totalorder %s14_s7, %s14_s7 }
   0x9   :  { %p205_p3 = scmp.ne.s32.totalorder %s14_s7, %s204_s15  ;;  %p210_p5 = scmp.lt.s32.totalorder %s204_s15, %s204_s15 }
   0xb   :  { %p211_p6 = por %p210_p5, %p209_p4 }
   0xd   :  { %p212_p7 = pnand %p211_p6, %p205_p3 }
   0xf   :  { %215 = shalt.err (!%p212_p7)
}
  0x10   :  { %s243_s16 = smov 384   ;;  %s244_s17 = smov 24  }
  0x11   :  { %19 = dma.hbm_to_vmem [thread:$0]  %s286_s0, 9600, %s14_s7, [#allocation3], %s243_s16, %s243_s16, %s244_s17  }
  0x12   :  { %238 = dma.done.wait [#allocation3], 9600  }
  0x13   :  { %239 = vsyncadd [#allocation3], 4294957696  ;;  %v23_v0 = vld [vmem:[#allocation2] sm:$0xff]  ;;  %v24_v1 = vld [vmem:[#allocation2 + $0x8] sm:$0xff]  ;;  %s245_s0 = smov [#allocation5]  }
  0x14   :  { %v25_v2 = vld [vmem:[#allocation2 + $0x10] sm:$0xff]  ;;  %98 = vst [vmem:[#allocation5] sm:$0xff] %v23_v0  ;;  %99 = vst [vmem:[#allocation5 + $0x8] sm:$0xff] %v24_v1  ;;  %v26_v3 = vld [vmem:[#allocation2 + $0x18] sm:$0xff]  ;;  %s178_s20 = sshll.u32 %s245_s0, 4  ;;  %s179_s20 = int_to_ptr.vmem [resolvable:$true] %s178_s20 }
  0x15   :  { %100 = vst [vmem:[#allocation5 + $0x10] sm:$0xff] %v25_v2  ;;  %v27_v4 = vld [vmem:[#allocation2 + $0x20] sm:$0xff]  ;;  %v28_v5 = vld [vmem:[#allocation2 + $0x28] sm:$0xff]  ;;  %101 = vst [vmem:[#allocation5 + $0x18] sm:$0xff] %v26_v3  ;;  %s216_s21 = scalar_lea.vmem %s179_s20, 9600  ;;  %p221_p9 = scmp.lt.s32.totalorder %s179_s20, %s179_s20 }
  0x16   :  { %102 = vst [vmem:[#allocation5 + $0x20] sm:$0xff] %v27_v4  ;;  %103 = vst [vmem:[#allocation5 + $0x28] sm:$0xff] %v28_v5  ;;  %v29_v6 = vld [vmem:[#allocation2 + $0x30] sm:$0xff]  ;;  %v30_v7 = vld [vmem:[#allocation2 + $0x38] sm:$0xff]  ;;  %p217_p8 = scmp.ne.s32.totalorder %s179_s20, %s216_s21  ;;  %p222_p10 = scmp.lt.s32.totalorder %s216_s21, %s216_s21 }
  0x17   :  { %v31_v8 = vld [vmem:[#allocation2 + $0x40] sm:$0xff]  ;;  %104 = vst [vmem:[#allocation5 + $0x30] sm:$0xff] %v29_v6  ;;  %105 = vst [vmem:[#allocation5 + $0x38] sm:$0xff] %v30_v7  ;;  %v32_v9 = vld [vmem:[#allocation2 + $0x48] sm:$0xff] }
  0x18   :  { %106 = vst [vmem:[#allocation5 + $0x40] sm:$0xff] %v31_v8  ;;  %v33_v10 = vld [vmem:[#allocation2 + $0x50] sm:$0xff]  ;;  %v34_v11 = vld [vmem:[#allocation2 + $0x58] sm:$0xff]  ;;  %107 = vst [vmem:[#allocation5 + $0x48] sm:$0xff] %v32_v9  ;;  %p223_p11 = por %p222_p10, %p221_p9 }
  0x19   :  { %108 = vst [vmem:[#allocation5 + $0x50] sm:$0xff] %v33_v10  ;;  %109 = vst [vmem:[#allocation5 + $0x58] sm:$0xff] %v34_v11  ;;  %v35_v12 = vld [vmem:[#allocation2 + $0x60] sm:$0xff]  ;;  %v36_v13 = vld [vmem:[#allocation2 + $0x68] sm:$0xff] }
  0x1a   :  { %v37_v14 = vld [vmem:[#allocation2 + $0x70] sm:$0xff]  ;;  %110 = vst [vmem:[#allocation5 + $0x60] sm:$0xff] %v35_v12  ;;  %111 = vst [vmem:[#allocation5 + $0x68] sm:$0xff] %v36_v13  ;;  %v38_v15 = vld [vmem:[#allocation2 + $0x78] sm:$0xff]  ;;  %p224_p12 = pnand %p223_p11, %p217_p8 }
  0x1b   :  { %112 = vst [vmem:[#allocation5 + $0x70] sm:$0xff] %v37_v14  ;;  %v39_v16 = vld [vmem:[#allocation2 + $0x80] sm:$0xff]  ;;  %v40_v17 = vld [vmem:[#allocation2 + $0x88] sm:$0xff]  ;;  %113 = vst [vmem:[#allocation5 + $0x78] sm:$0xff] %v38_v15 }
  0x1c   :  { %114 = vst [vmem:[#allocation5 + $0x80] sm:$0xff] %v39_v16  ;;  %115 = vst [vmem:[#allocation5 + $0x88] sm:$0xff] %v40_v17  ;;  %v41_v18 = vld [vmem:[#allocation2 + $0x90] sm:$0xff]  ;;  %v42_v19 = vld [vmem:[#allocation2 + $0x98] sm:$0xff] }
  0x1d   :  { %v43_v20 = vld [vmem:[#allocation2 + $0xa0] sm:$0xff]  ;;  %116 = vst [vmem:[#allocation5 + $0x90] sm:$0xff] %v41_v18  ;;  %117 = vst [vmem:[#allocation5 + $0x98] sm:$0xff] %v42_v19  ;;  %v44_v21 = vld [vmem:[#allocation2 + $0xa8] sm:$0xff] }
  0x1e   :  { %118 = vst [vmem:[#allocation5 + $0xa0] sm:$0xff] %v43_v20  ;;  %v45_v22 = vld [vmem:[#allocation2 + $0xb0] sm:$0xff]  ;;  %v46_v23 = vld [vmem:[#allocation2 + $0xb8] sm:$0xff]  ;;  %119 = vst [vmem:[#allocation5 + $0xa8] sm:$0xff] %v44_v21 }
  0x1f   :  { %120 = vst [vmem:[#allocation5 + $0xb0] sm:$0xff] %v45_v22  ;;  %121 = vst [vmem:[#allocation5 + $0xb8] sm:$0xff] %v46_v23  ;;  %v47_v24 = vld [vmem:[#allocation2 + $0xc0] sm:$0xff]  ;;  %v48_v25 = vld [vmem:[#allocation2 + $0xc8] sm:$0xff] }
  0x20   :  { %v49_v26 = vld [vmem:[#allocation2 + $0xd0] sm:$0xff]  ;;  %122 = vst [vmem:[#allocation5 + $0xc0] sm:$0xff] %v47_v24  ;;  %123 = vst [vmem:[#allocation5 + $0xc8] sm:$0xff] %v48_v25  ;;  %v50_v27 = vld [vmem:[#allocation2 + $0xd8] sm:$0xff] }
  0x21   :  { %124 = vst [vmem:[#allocation5 + $0xd0] sm:$0xff] %v49_v26  ;;  %v51_v28 = vld [vmem:[#allocation2 + $0xe0] sm:$0xff]  ;;  %v52_v29 = vld [vmem:[#allocation2 + $0xe8] sm:$0xff]  ;;  %125 = vst [vmem:[#allocation5 + $0xd8] sm:$0xff] %v50_v27 }
  0x22   :  { %126 = vst [vmem:[#allocation5 + $0xe0] sm:$0xff] %v51_v28  ;;  %127 = vst [vmem:[#allocation5 + $0xe8] sm:$0xff] %v52_v29  ;;  %v53_v30 = vld [vmem:[#allocation2 + $0xf0] sm:$0xff]  ;;  %v54_v31 = vld [vmem:[#allocation2 + $0xf8] sm:$0xff] }
  0x23   :  { %v55_v32 = vld [vmem:[#allocation2 + $0x100] sm:$0xff]  ;;  %128 = vst [vmem:[#allocation5 + $0xf0] sm:$0xff] %v53_v30  ;;  %129 = vst [vmem:[#allocation5 + $0xf8] sm:$0xff] %v54_v31  ;;  %v56_v33 = vld [vmem:[#allocation2 + $0x108] sm:$0xff] }
  0x24   :  { %130 = vst [vmem:[#allocation5 + $0x100] sm:$0xff] %v55_v32  ;;  %v57_v34 = vld [vmem:[#allocation2 + $0x110] sm:$0xff]  ;;  %v58_v35 = vld [vmem:[#allocation2 + $0x118] sm:$0xff]  ;;  %131 = vst [vmem:[#allocation5 + $0x108] sm:$0xff] %v56_v33 }
  0x25   :  { %132 = vst [vmem:[#allocation5 + $0x110] sm:$0xff] %v57_v34  ;;  %133 = vst [vmem:[#allocation5 + $0x118] sm:$0xff] %v58_v35  ;;  %v59_v36 = vld [vmem:[#allocation2 + $0x120] sm:$0xff]  ;;  %v60_v37 = vld [vmem:[#allocation2 + $0x128] sm:$0xff] }
  0x26   :  { %v61_v38 = vld [vmem:[#allocation2 + $0x130] sm:$0xff]  ;;  %134 = vst [vmem:[#allocation5 + $0x120] sm:$0xff] %v59_v36  ;;  %135 = vst [vmem:[#allocation5 + $0x128] sm:$0xff] %v60_v37  ;;  %v62_v39 = vld [vmem:[#allocation2 + $0x138] sm:$0xff] }
  0x27   :  { %136 = vst [vmem:[#allocation5 + $0x130] sm:$0xff] %v61_v38  ;;  %v63_v40 = vld [vmem:[#allocation2 + $0x140] sm:$0xff]  ;;  %v64_v41 = vld [vmem:[#allocation2 + $0x148] sm:$0xff]  ;;  %137 = vst [vmem:[#allocation5 + $0x138] sm:$0xff] %v62_v39 }
  0x28   :  { %138 = vst [vmem:[#allocation5 + $0x140] sm:$0xff] %v63_v40  ;;  %139 = vst [vmem:[#allocation5 + $0x148] sm:$0xff] %v64_v41  ;;  %v65_v42 = vld [vmem:[#allocation2 + $0x150] sm:$0xff]  ;;  %v66_v43 = vld [vmem:[#allocation2 + $0x158] sm:$0xff] }
  0x29   :  { %v67_v44 = vld [vmem:[#allocation2 + $0x160] sm:$0xff]  ;;  %140 = vst [vmem:[#allocation5 + $0x150] sm:$0xff] %v65_v42  ;;  %141 = vst [vmem:[#allocation5 + $0x158] sm:$0xff] %v66_v43  ;;  %v68_v45 = vld [vmem:[#allocation2 + $0x168] sm:$0xff] }
  0x2a   :  { %142 = vst [vmem:[#allocation5 + $0x160] sm:$0xff] %v67_v44  ;;  %v69_v46 = vld [vmem:[#allocation2 + $0x170] sm:$0xff]  ;;  %v70_v47 = vld [vmem:[#allocation2 + $0x178] sm:$0xff]  ;;  %143 = vst [vmem:[#allocation5 + $0x168] sm:$0xff] %v68_v45 }
  0x2b   :  { %144 = vst [vmem:[#allocation5 + $0x170] sm:$0xff] %v69_v46  ;;  %145 = vst [vmem:[#allocation5 + $0x178] sm:$0xff] %v70_v47  ;;  %v71_v48 = vld [vmem:[#allocation2 + $0x180] sm:$0xff]  ;;  %v72_v49 = vld [vmem:[#allocation2 + $0x188] sm:$0xff] }
  0x2c   :  { %v73_v50 = vld [vmem:[#allocation2 + $0x190] sm:$0xff]  ;;  %146 = vst [vmem:[#allocation5 + $0x180] sm:$0xff] %v71_v48  ;;  %147 = vst [vmem:[#allocation5 + $0x188] sm:$0xff] %v72_v49  ;;  %v74_v51 = vld [vmem:[#allocation2 + $0x198] sm:$0xff] }
  0x2d   :  { %148 = vst [vmem:[#allocation5 + $0x190] sm:$0xff] %v73_v50  ;;  %v75_v52 = vld [vmem:[#allocation2 + $0x1a0] sm:$0xff]  ;;  %v76_v53 = vld [vmem:[#allocation2 + $0x1a8] sm:$0xff]  ;;  %149 = vst [vmem:[#allocation5 + $0x198] sm:$0xff] %v74_v51 }
  0x2e   :  { %150 = vst [vmem:[#allocation5 + $0x1a0] sm:$0xff] %v75_v52  ;;  %151 = vst [vmem:[#allocation5 + $0x1a8] sm:$0xff] %v76_v53  ;;  %v77_v54 = vld [vmem:[#allocation2 + $0x1b0] sm:$0xff]  ;;  %v78_v55 = vld [vmem:[#allocation2 + $0x1b8] sm:$0xff] }
  0x2f   :  { %v79_v56 = vld [vmem:[#allocation2 + $0x1c0] sm:$0xff]  ;;  %152 = vst [vmem:[#allocation5 + $0x1b0] sm:$0xff] %v77_v54  ;;  %153 = vst [vmem:[#allocation5 + $0x1b8] sm:$0xff] %v78_v55  ;;  %v80_v57 = vld [vmem:[#allocation2 + $0x1c8] sm:$0xff] }
  0x30   :  { %154 = vst [vmem:[#allocation5 + $0x1c0] sm:$0xff] %v79_v56  ;;  %v81_v58 = vld [vmem:[#allocation2 + $0x1d0] sm:$0xff]  ;;  %v82_v59 = vld [vmem:[#allocation2 + $0x1d8] sm:$0xff]  ;;  %155 = vst [vmem:[#allocation5 + $0x1c8] sm:$0xff] %v80_v57 }
  0x31   :  { %156 = vst [vmem:[#allocation5 + $0x1d0] sm:$0xff] %v81_v58  ;;  %157 = vst [vmem:[#allocation5 + $0x1d8] sm:$0xff] %v82_v59  ;;  %v83_v60 = vld [vmem:[#allocation2 + $0x1e0] sm:$0xff]  ;;  %v84_v61 = vld [vmem:[#allocation2 + $0x1e8] sm:$0xff] }
  0x32   :  { %v85_v62 = vld [vmem:[#allocation2 + $0x1f0] sm:$0xff]  ;;  %158 = vst [vmem:[#allocation5 + $0x1e0] sm:$0xff] %v83_v60  ;;  %159 = vst [vmem:[#allocation5 + $0x1e8] sm:$0xff] %v84_v61  ;;  %v86_v63 = vld [vmem:[#allocation2 + $0x1f8] sm:$0xff] }
  0x33   :  { %160 = vst [vmem:[#allocation5 + $0x1f0] sm:$0xff] %v85_v62  ;;  %v87_v0 = vld [vmem:[#allocation2 + $0x200] sm:$0xff]  ;;  %v88_v1 = vld [vmem:[#allocation2 + $0x208] sm:$0xff]  ;;  %161 = vst [vmem:[#allocation5 + $0x1f8] sm:$0xff] %v86_v63 }
  0x34   :  { %162 = vst [vmem:[#allocation5 + $0x200] sm:$0xff] %v87_v0  ;;  %163 = vst [vmem:[#allocation5 + $0x208] sm:$0xff] %v88_v1  ;;  %v89_v2 = vld [vmem:[#allocation2 + $0x210] sm:$0xff]  ;;  %v90_v3 = vld [vmem:[#allocation2 + $0x218] sm:$0xff] }
  0x35   :  { %v91_v4 = vld [vmem:[#allocation2 + $0x220] sm:$0xff]  ;;  %164 = vst [vmem:[#allocation5 + $0x210] sm:$0xff] %v89_v2  ;;  %165 = vst [vmem:[#allocation5 + $0x218] sm:$0xff] %v90_v3  ;;  %v92_v5 = vld [vmem:[#allocation2 + $0x228] sm:$0xff] }
  0x36   :  { %166 = vst [vmem:[#allocation5 + $0x220] sm:$0xff] %v91_v4  ;;  %v93_v6 = vld [vmem:[#allocation2 + $0x230] sm:$0xff]  ;;  %v94_v7 = vld [vmem:[#allocation2 + $0x238] sm:$0xff]  ;;  %167 = vst [vmem:[#allocation5 + $0x228] sm:$0xff] %v92_v5 }
  0x37   :  { %168 = vst [vmem:[#allocation5 + $0x230] sm:$0xff] %v93_v6  ;;  %169 = vst [vmem:[#allocation5 + $0x238] sm:$0xff] %v94_v7  ;;  %v95_v8 = vld [vmem:[#allocation2 + $0x240] sm:$0xf]  ;;  %v96_v9 = vld [vmem:[#allocation2 + $0x248] sm:$0xf] }
  0x38   :  { %v97_v10 = vld [vmem:[#allocation2 + $0x250] sm:$0xf]  ;;  %170 = vst [vmem:[#allocation5 + $0x240] sm:$0xf] %v95_v8  ;;  %171 = vst [vmem:[#allocation5 + $0x248] sm:$0xf] %v96_v9 }
  0x39   :  { %172 = vst [vmem:[#allocation5 + $0x250] sm:$0xf] %v97_v10 }
  0x3a   :  { %227 = shalt.err (!%p224_p12)
}
  0x3b   :  { %s228_s24 = scalar_lea.hbm %s287_s1, 9600 }
  0x3c   :  { %p229_p13 = scmp.ne.s32.totalorder %s287_s1, %s228_s24  ;;  %p232_p0 = scmp.lt.u32.totalorder %s228_s24, %s287_s1 }
  0x3e   :  { %p234_p1 = pnand %p232_p0, %p229_p13 }
  0x40   :  { %237 = shalt.err (!%p234_p1)
}
  0x41   :  { %184 = dma.vmem_to_hbm [thread:$0]  %s179_s20, 9600, %s287_s1, [#allocation4], %s243_s16, %s243_s16, %s244_s17  }
  0x42   :  { %240 = dma.done.wait [#allocation4], 9600  }
  0x43   :  { %241 = vsyncadd [#allocation4], 4294957696 }
  0x44   :  { %188 = vsyncpa [#allocation3], 1 }
  0x45   :  { %189 = vsyncpa [#allocation4], 1 }

</bundles_post_ra>
